<compile_context>
chip_gen: v7x
topology: tpu7x:2x2x1
jax: 0.10.0
libtpu: 0.0.40
codegen_flags: <defaults>
</compile_context>

<pallas_src>
import functools

import jax
import jax.numpy as jnp
from jax.experimental import pallas as pl
from jax.experimental.pallas import tpu as pltpu

_LANE = 128      # lane width (last dim)
_SUBLANE = 8     # f32 sublane packing (second-to-last dim)


def _round_up(n, m):
    return ((n + m - 1) // m) * m


@functools.lru_cache(maxsize=None)
def _vmem_cap_bytes():
    """Per-chip VMEM request cap with ~20% headroom for Mosaic scratch/sems."""
    default_capacity = 128 * 1024 * 1024
    try:
        info = pltpu.get_tpu_info()
        capacity = int(getattr(info, "vmem_capacity_bytes", default_capacity))
    except Exception:
        capacity = default_capacity
    # ~52 MiB on v7x (64 MiB/TC), ~102 MiB on v5e/v6e (128 MiB).
    return int(capacity * 0.8)


def _resident_spec(shape):
    """BlockSpec for a block that stays VMEM-resident across all grid steps.

    Constant index_map => the same block every step; Buffered(1) => only one
    VMEM buffer is allocated for it (no pointless double-buffering)."""
    try:
        return pl.BlockSpec(shape, lambda i: (0, 0), pipeline_mode=pl.Buffered(1))
    except Exception:
        # Older JAX without pipeline_mode support: fall back to the default
        # (double-buffered) pipeline; still correct, just costs 2x weight VMEM.
        return pl.BlockSpec(shape, lambda i: (0, 0))


def _choose_batch_tiling(B, tile_b):
    """Pad batch only to sublane granularity and pick a tile that divides it.

    Avoids round_up(B, tile_b) over-padding (up to ~2x wasted rows) while
    keeping per-step M large enough that per-grid-step overhead and MXU
    under-fill stay small.  When the padded batch exceeds one tile the grid
    has >= 2 steps, so the 'parallel' axis can shard across v7x's two TCs."""
    B8 = _round_up(max(B, 1), _SUBLANE)
    if B8 <= tile_b:
        return B8, B8                       # single grid step, minimal padding
    best = _SUBLANE
    for d in range(_SUBLANE, tile_b + 1, _SUBLANE):
        if B8 % d == 0:
            best = d
    if best >= 64:
        return B8, best                     # exact divisor, zero wasted rows
    # Degenerate divisors only: pad modestly to a 256-row tile instead of
    # running many tiny grid steps.
    tb = min(tile_b, 256)
    return _round_up(B8, tb), tb


# --------------------------------------------------------------------------
# Kernel
# --------------------------------------------------------------------------
def _make_mlp_kernel(num_layers):
    """Fused MLP kernel. num_layers = num_hidden + 1 (final Linear, no ReLU).

    Ref order: x_tile, (w_0, b_0), ..., (w_{L-1}, b_{L-1}), out_tile.
    BatchNorm (eval mode) and the Linear bias are pre-folded into (w_i, b_i).
    Dropout is the identity at inference time.
    """

    def kernel(*refs):
        x_ref = refs[0]
        out_ref = refs[-1]
        h = x_ref[...]                        # act dtype (f32 or bf16)
        idx = 1
        for li in range(num_layers):
            w = refs[idx][...]
            b = refs[idx + 1][...]            # (1, d_out_pad), f32
            idx += 2
            if h.dtype != w.dtype:            # no-op for layer 0 / all-f32 path
                h = h.astype(w.dtype)
            h = jnp.dot(h, w, preferred_element_type=jnp.float32) + b
            if li < num_layers - 1:
                h = jnp.maximum(h, 0.0)       # ReLU (Dropout: identity in eval)
        out_ref[...] = h.astype(out_ref.dtype)

    return kernel


# --------------------------------------------------------------------------
# Parameter construction (mirrors the PyTorch module's structure)
# --------------------------------------------------------------------------
def init_raw_params(key, input_dim, hidden_dims, num_classes):
    """Deterministic per-layer params matching Linear+BatchNorm1d layers.
    BN stats/affine are randomized so the fold is actually exercised."""
    layers = []
    dims = [input_dim] + list(hidden_dims)
    for i in range(len(hidden_dims)):
        d_in, d_out = dims[i], dims[i + 1]
        key, kw, kb, kg, kbeta, km, kv = jax.random.split(key, 7)
        layers.append(dict(
            w=jax.random.normal(kw, (d_in, d_out), jnp.float32) / jnp.sqrt(d_in),
            b=jax.random.normal(kb, (d_out,), jnp.float32) * 0.1,
            gamma=1.0 + 0.1 * jax.random.normal(kg, (d_out,), jnp.float32),
            beta=0.1 * jax.random.normal(kbeta, (d_out,), jnp.float32),
            mean=0.1 * jax.random.normal(km, (d_out,), jnp.float32),
            var=jax.random.uniform(kv, (d_out,), jnp.float32, 0.5, 1.5),
        ))
    key, kw, kb = jax.random.split(key, 3)
    d_last = dims[-1]
    layers.append(dict(
        w=jax.random.normal(kw, (d_last, num_classes), jnp.float32) / jnp.sqrt(d_last),
        b=jax.random.normal(kb, (num_classes,), jnp.float32) * 0.1,
    ))
    return layers


def fold_and_pad(raw_layers, eps=1e-5, param_dtype=jnp.float32):
    """Fold BatchNorm + bias into the weights and pad feature dims.

    Output (lane) dims are padded to multiples of 128 (lane-dense stores,
    MXU-friendly).  The first layer's contraction dim — the one streamed from
    HBM with x every grid step — is padded only to sublane granularity
    (8 for f32, 16 for bf16) when it is below 128.  Returns [(W_pad, b_pad)].
    """
    k_gran = _SUBLANE if jnp.dtype(param_dtype).itemsize >= 4 else 2 * _SUBLANE
    folded = []
    for li, layer in enumerate(raw_layers):
        w = layer["w"]
        b = layer["b"]
        if "gamma" in layer:
            scale = layer["gamma"] / jnp.sqrt(layer["var"] + eps)
            shift = layer["beta"] - layer["mean"] * scale
            w = w * scale[None, :]
            b = b * scale + shift
        d_in, d_out = w.shape
        if li == 0 and d_in < _LANE:
            d_in_p = _round_up(d_in, k_gran)
        else:
            d_in_p = _round_up(d_in, _LANE)   # == previous layer's padded d_out
        d_out_p = _round_up(d_out, _LANE)
        w_p = jnp.zeros((d_in_p, d_out_p), param_dtype)
        w_p = w_p.at[:d_in, :d_out].set(w.astype(param_dtype))
        b_p = jnp.zeros((1, d_out_p), jnp.float32).at[:, :d_out].set(b)
        folded.append((w_p, b_p))
    return folded


# --------------------------------------------------------------------------
# Wrapper
# --------------------------------------------------------------------------
@functools.partial(jax.jit, static_argnames=("num_classes", "tile_b"))
def mlp_forward(x, folded_params, *, num_classes, tile_b=512):
    num_layers = len(folded_params)
    kernel = _make_mlp_kernel(num_layers)

    B, F = x.shape
    act_dtype = folded_params[0][0].dtype     # stream activations in param dtype
    act_bytes_per_el = jnp.dtype(act_dtype).itemsize
    in_pad = folded_params[0][0].shape[0]
    out_pad = folded_params[-1][0].shape[1]

    # Batch tiling: pad only to sublane granularity, tile divides the padding.
    b_pad, tb = _choose_batch_tiling(B, tile_b)

    # Avoid a full pad copy of x when it is already aligned (memory-bound!).
    if b_pad == B and in_pad == F:
        x_p = x if x.dtype == act_dtype else x.astype(act_dtype)
    else:
        x_p = jnp.zeros((b_pad, in_pad), act_dtype).at[:B, :F].set(
            x.astype(act_dtype))

    flat_params = []
    in_specs = [pl.BlockSpec((tb, in_pad), lambda i: (i, 0))]
    for (w, b) in folded_params:
        flat_params.extend([w, b])
        # Constant index_map + Buffered(1): VMEM-resident, single-buffered.
        in_specs.append(_resident_spec(w.shape))
        in_specs.append(_resident_spec(b.shape))
    out_spec = pl.BlockSpec((tb, out_pad), lambda i: (i, 0))

    # Cost estimate (advisory) + honest VMEM budget.
    flops = 0
    param_bytes = 0
    max_width = in_pad
    for (w, b) in folded_params:
        flops += 2 * b_pad * w.shape[0] * w.shape[1]
        param_bytes += w.size * w.dtype.itemsize + b.size * b.dtype.itemsize
        max_width = max(max_width, w.shape[1])
    bytes_accessed = int(param_bytes
                         + x_p.size * x_p.dtype.itemsize
                         + b_pad * out_pad * 4)

    vmem_cap = _vmem_cap_bytes()
    if param_bytes > int(0.75 * vmem_cap):
        # TODO(synk): weight-streaming fallback (extra grid axis or
        # pltpu.emit_pipeline over layer tiles) for weights that outgrow VMEM.
        raise NotImplementedError(
            f"folded weights ({param_bytes / 2**20:.1f} MiB) exceed the "
            f"VMEM-resident budget ({0.75 * vmem_cap / 2**20:.1f} MiB)")

    # Single-buffered resident weights + double-buffered activation tiles
    # + f32 intermediates inside the body.
    tile_io_bytes = 2 * (tb * in_pad * act_bytes_per_el) + 2 * (tb * out_pad * 4)
    inter_bytes = 2 * tb * max_width * 4
    vmem_needed = param_bytes + tile_io_bytes + inter_bytes
    vmem_limit = int(min(vmem_cap,
                         max(int(1.5 * vmem_needed), 16 * 1024 * 1024)))

    out = pl.pallas_call(
        kernel,
        out_shape=jax.ShapeDtypeStruct((b_pad, out_pad), jnp.float32),
        grid=(b_pad // tb,),
        in_specs=in_specs,
        out_specs=out_spec,
        compiler_params=pltpu.CompilerParams(
            dimension_semantics=("parallel",),
            vmem_limit_bytes=vmem_limit,
        ),
        cost_estimate=pl.CostEstimate(
            flops=int(flops), transcendentals=0, bytes_accessed=bytes_accessed),
    )(x_p, *flat_params)

    return out[:B, :num_classes]


# --------------------------------------------------------------------------
# Reference (PyTorch eval-mode semantics, unfolded params)
# --------------------------------------------------------------------------
def reference_forward(x, raw_layers, eps=1e-5):
    h = x.astype(jnp.float32)
    for layer in raw_layers:
        h = h @ layer["w"] + layer["b"]
        if "gamma" in layer:
            h = (h - layer["mean"]) / jnp.sqrt(layer["var"] + eps)
            h = h * layer["gamma"] + layer["beta"]
            h = jnp.maximum(h, 0.0)
            # Dropout: identity in eval mode.
    return h


if __name__ == "__main__":
    input_dim = 16
    hidden_dims = [32, 16]
    num_classes = 2
    batch = 8

    key = jax.random.PRNGKey(0)
    key, kx = jax.random.split(key)
    x = jax.random.normal(kx, (batch, input_dim), jnp.float32)

    raw = init_raw_params(key, input_dim, hidden_dims, num_classes)
    ref = reference_forward(x, raw)

    # f32 weights/activations: tight numerical check.
    folded_f32 = fold_and_pad(raw, param_dtype=jnp.float32)
    out_f32 = jax.block_until_ready(
        mlp_forward(x, tuple(folded_f32), num_classes=num_classes))
    assert out_f32.shape == (batch, num_classes)
    assert jnp.allclose(out_f32, ref, atol=1e-4, rtol=1e-4), \
        float(jnp.max(jnp.abs(out_f32 - ref)))

    # bf16 weights/activations (native MXU dtype, halves streamed bytes;
    # f32 accumulation + f32 bias): reduced precision -> loose check only.
    folded_bf16 = fold_and_pad(raw, param_dtype=jnp.bfloat16)
    out_bf16 = jax.block_until_ready(
        mlp_forward(x, tuple(folded_bf16), num_classes=num_classes))
    assert out_bf16.shape == (batch, num_classes)
    assert bool(jnp.all(jnp.isfinite(out_bf16)))
    assert jnp.allclose(out_bf16, ref, atol=1e-1, rtol=1e-1), \
        float(jnp.max(jnp.abs(out_bf16 - ref)))

    print("KERNEL_OK")
</pallas_src>

<mosaic_0001>
module attributes {stable_mosaic.version = 11 : i64} {
  func.func @kernel(%arg0: i32, %arg1: memref<8x16xf32, #tpu.memory_space<vmem>>, %arg2: memref<16x128xf32, #tpu.memory_space<vmem>>, %arg3: memref<1x128xf32, #tpu.memory_space<vmem>>, %arg4: memref<128x128xf32, #tpu.memory_space<vmem>>, %arg5: memref<1x128xf32, #tpu.memory_space<vmem>>, %arg6: memref<128x128xf32, #tpu.memory_space<vmem>>, %arg7: memref<1x128xf32, #tpu.memory_space<vmem>>, %arg8: memref<8x128xf32, #tpu.memory_space<vmem>>) attributes {dimension_semantics = [#tpu.dimension_semantics<parallel>], iteration_bounds = array<i64: 1>, scalar_prefetch = 0 : i64, scratch_operands = 0 : i64, tpu.core_type = #tpu.core_type<tc>, window_params = [{transform_indices = @transform_0, window_bounds = array<i64: 8, 16>}, {pipeline_mode = #tpu.pipeline_mode<synchronous>, transform_indices = @transform_1, window_bounds = array<i64: 16, 128>}, {pipeline_mode = #tpu.pipeline_mode<synchronous>, transform_indices = @transform_2, window_bounds = array<i64: 1, 128>}, {pipeline_mode = #tpu.pipeline_mode<synchronous>, transform_indices = @transform_3, window_bounds = array<i64: 128, 128>}, {pipeline_mode = #tpu.pipeline_mode<synchronous>, transform_indices = @transform_4, window_bounds = array<i64: 1, 128>}, {pipeline_mode = #tpu.pipeline_mode<synchronous>, transform_indices = @transform_5, window_bounds = array<i64: 128, 128>}, {pipeline_mode = #tpu.pipeline_mode<synchronous>, transform_indices = @transform_6, window_bounds = array<i64: 1, 128>}, {transform_indices = @transform_7, window_bounds = array<i64: 8, 128>}]} {
    %c0 = arith.constant 0 : index
    %c0_0 = arith.constant 0 : index
    %0 = vector.load %arg1[%c0, %c0_0] : memref<8x16xf32, #tpu.memory_space<vmem>>, vector<8x16xf32>
    %c0_1 = arith.constant 0 : index
    %c0_2 = arith.constant 0 : index
    %1 = vector.load %arg2[%c0_1, %c0_2] : memref<16x128xf32, #tpu.memory_space<vmem>>, vector<16x128xf32>
    %c0_3 = arith.constant 0 : index
    %c0_4 = arith.constant 0 : index
    %2 = vector.load %arg3[%c0_3, %c0_4] : memref<1x128xf32, #tpu.memory_space<vmem>>, vector<1x128xf32>
    %cst = arith.constant dense<0.000000e+00> : vector<8x128xf32>
    %3 = tpu.matmul %0, %1, %cst {dimension_numbers = #tpu.dot_dimension_numbers<[1], [0], [0], [1], [0, 0, 1, 1], [], []>} : vector<8x16xf32>, vector<16x128xf32>, vector<8x128xf32> -> vector<8x128xf32>
    %4 = vector.broadcast %2 : vector<1x128xf32> to vector<8x128xf32>
    %5 = arith.addf %3, %4 : vector<8x128xf32>
    %cst_5 = arith.constant 0.000000e+00 : f32
    %6 = vector.broadcast %cst_5 : f32 to vector<8x128xf32>
    %7 = arith.maximumf %5, %6 : vector<8x128xf32>
    %c0_6 = arith.constant 0 : index
    %c0_7 = arith.constant 0 : index
    %8 = vector.load %arg4[%c0_6, %c0_7] : memref<128x128xf32, #tpu.memory_space<vmem>>, vector<128x128xf32>
    %c0_8 = arith.constant 0 : index
    %c0_9 = arith.constant 0 : index
    %9 = vector.load %arg5[%c0_8, %c0_9] : memref<1x128xf32, #tpu.memory_space<vmem>>, vector<1x128xf32>
    %cst_10 = arith.constant dense<0.000000e+00> : vector<8x128xf32>
    %10 = tpu.matmul %7, %8, %cst_10 {dimension_numbers = #tpu.dot_dimension_numbers<[1], [0], [0], [1], [0, 0, 1, 1], [], []>} : vector<8x128xf32>, vector<128x128xf32>, vector<8x128xf32> -> vector<8x128xf32>
    %11 = vector.broadcast %9 : vector<1x128xf32> to vector<8x128xf32>
    %12 = arith.addf %10, %11 : vector<8x128xf32>
    %cst_11 = arith.constant 0.000000e+00 : f32
    %13 = vector.broadcast %cst_11 : f32 to vector<8x128xf32>
    %14 = arith.maximumf %12, %13 : vector<8x128xf32>
    %c0_12 = arith.constant 0 : index
    %c0_13 = arith.constant 0 : index
    %15 = vector.load %arg6[%c0_12, %c0_13] : memref<128x128xf32, #tpu.memory_space<vmem>>, vector<128x128xf32>
    %c0_14 = arith.constant 0 : index
    %c0_15 = arith.constant 0 : index
    %16 = vector.load %arg7[%c0_14, %c0_15] : memref<1x128xf32, #tpu.memory_space<vmem>>, vector<1x128xf32>
    %cst_16 = arith.constant dense<0.000000e+00> : vector<8x128xf32>
    %17 = tpu.matmul %14, %15, %cst_16 {dimension_numbers = #tpu.dot_dimension_numbers<[1], [0], [0], [1], [0, 0, 1, 1], [], []>} : vector<8x128xf32>, vector<128x128xf32>, vector<8x128xf32> -> vector<8x128xf32>
    %18 = vector.broadcast %16 : vector<1x128xf32> to vector<8x128xf32>
    %19 = arith.addf %17, %18 : vector<8x128xf32>
    %c0_17 = arith.constant 0 : index
    %c0_18 = arith.constant 0 : index
    %20 = vector.load %arg8[%c0_17, %c0_18] : memref<8x128xf32, #tpu.memory_space<vmem>>, vector<8x128xf32>
    tpu.vector_store %arg8[%c0_17, %c0_18], %19 {strides = array<i32>} : memref<8x128xf32, #tpu.memory_space<vmem>>, vector<8x128xf32>,
    return
  }
  func.func @transform_0(%arg0: i32) -> (i32, i32) {
    %c0_i32 = arith.constant 0 : i32
    %c0_i32_0 = arith.constant 0 : i32
    return %arg0, %c0_i32 : i32, i32
  }
  func.func @transform_1(%arg0: i32) -> (i32, i32) {
    %c0_i32 = arith.constant 0 : i32
    %c0_i32_0 = arith.constant 0 : i32
    %c0_i32_1 = arith.constant 0 : i32
    return %c0_i32, %c0_i32_0 : i32, i32
  }
  func.func @transform_2(%arg0: i32) -> (i32, i32) {
    %c0_i32 = arith.constant 0 : i32
    %c0_i32_0 = arith.constant 0 : i32
    %c0_i32_1 = arith.constant 0 : i32
    return %c0_i32, %c0_i32_0 : i32, i32
  }
  func.func @transform_3(%arg0: i32) -> (i32, i32) {
    %c0_i32 = arith.constant 0 : i32
    %c0_i32_0 = arith.constant 0 : i32
    %c0_i32_1 = arith.constant 0 : i32
    return %c0_i32, %c0_i32_0 : i32, i32
  }
  func.func @transform_4(%arg0: i32) -> (i32, i32) {
    %c0_i32 = arith.constant 0 : i32
    %c0_i32_0 = arith.constant 0 : i32
    %c0_i32_1 = arith.constant 0 : i32
    return %c0_i32, %c0_i32_0 : i32, i32
  }
  func.func @transform_5(%arg0: i32) -> (i32, i32) {
    %c0_i32 = arith.constant 0 : i32
    %c0_i32_0 = arith.constant 0 : i32
    %c0_i32_1 = arith.constant 0 : i32
    return %c0_i32, %c0_i32_0 : i32, i32
  }
  func.func @transform_6(%arg0: i32) -> (i32, i32) {
    %c0_i32 = arith.constant 0 : i32
    %c0_i32_0 = arith.constant 0 : i32
    %c0_i32_1 = arith.constant 0 : i32
    return %c0_i32, %c0_i32_0 : i32, i32
  }
  func.func @transform_7(%arg0: i32) -> (i32, i32) {
    %c0_i32 = arith.constant 0 : i32
    %c0_i32_0 = arith.constant 0 : i32
    return %arg0, %c0_i32 : i32, i32
  }
}

</mosaic_0001>

<bundles_post_ra>
// kernel: mlp_forward.1
= control target key start
LH: loop header
LB: loop body
LE: loop exit
PB: predicated region body
PF: predicated region fallthrough
CT: control target
= control target key end

     0   :  { %12 = vsyncpa [#allocation3], 0  ;;  %s769_s0 = inlined_call_operand.hbm [shape: f32[8,16], index: 0, kind: input, shape index: {}]   ;;  %s770_s1 = inlined_call_operand.hbm [shape: f32[16,128], index: 1, kind: input, shape index: {}]   ;;  %s771_s2 = inlined_call_operand.vmem [shape: f32[1,128], index: 2, kind: input, shape index: {}]   ;;  %s772_s3 = inlined_call_operand.hbm [shape: f32[128,128], index: 3, kind: input, shape index: {}]   ;;  %s773_s4 = inlined_call_operand.vmem [shape: f32[1,128], index: 4, kind: input, shape index: {}]   ;;  %s774_s5 = inlined_call_operand.hbm [shape: f32[128,128], index: 5, kind: input, shape index: {}]   ;;  %s775_s6 = inlined_call_operand.vmem [shape: f32[1,128], index: 6, kind: input, shape index: {}]   ;;  %s776_s7 = inlined_call_operand.vmem [shape: f32[8,128], index: 7, kind: output, shape index: {}]  }
   0x1   :  { %13 = vsyncpa [#allocation5], 0 }
   0x2   :  { %14 = vsyncpa [#allocation8], 0  ;;  %s631_s24 = smov [#allocation4]   ;;  %s537_s28 = scalar_lea.hbm %s770_s1, 256 }
   0x3   :  { %s30_s25 = sshll.u32 %s631_s24, 4  ;;  %p538_p0 = scmp.ne.s32.totalorder %s770_s1, %s537_s28  ;;  %s31_s25 = int_to_ptr.vmem [resolvable:$true] %s30_s25 }
   0x4   :  { %p541_p1 = scmp.lt.u32.totalorder %s537_s28, %s770_s1 }
   0x6   :  { %p543_p2 = pnand %p541_p1, %p538_p0 }
   0x8   :  { %546 = shalt.err (!%p543_p2)
}
   0x9   :  { %s547_s10 = scalar_lea.vmem %s31_s25, 256  ;;  %p552_p4 = scmp.lt.s32.totalorder %s31_s25, %s31_s25 }
   0xa   :  { %p548_p3 = scmp.ne.s32.totalorder %s31_s25, %s547_s10  ;;  %p553_p5 = scmp.lt.s32.totalorder %s547_s10, %s547_s10 }
   0xc   :  { %p554_p6 = por %p553_p5, %p552_p4 }
   0xe   :  { %p555_p7 = pnand %p554_p6, %p548_p3 }
  0x10   :  { %558 = shalt.err (!%p555_p7)
}
  0x11   :  { %s632_s11 = smov 128   ;;  %s633_s12 = smov 8  }
  0x12   :  { %36 = dma.hbm_to_vmem [thread:$0]  %s770_s1, 256, %s31_s25, [#allocation5], %s632_s11, %s632_s11, %s633_s12  }
  0x13   :  { %s634_s15 = smov [#allocation2]   ;;  %s635_s17 = smov [#allocation6]  }
  0x14   :  { %s21_s16 = sshll.u32 %s634_s15, 4  ;;  %s44_s18 = sshll.u32 %s635_s17, 4  ;;  %s22_s16 = int_to_ptr.vmem [resolvable:$true] %s21_s16  ;;  %s45_s18 = int_to_ptr.vmem [resolvable:$true] %s44_s18 }
  0x15   :  { %s559_s21 = scalar_lea.hbm %s769_s0, 128 }
  0x16   :  { %p560_p8 = scmp.ne.s32.totalorder %s769_s0, %s559_s21  ;;  %p563_p9 = scmp.lt.u32.totalorder %s559_s21, %s769_s0 }
  0x18   :  { %p565_p10 = pnand %p563_p9, %p560_p8 }
  0x1a   :  { %568 = shalt.err (!%p565_p10)
}
  0x1b   :  { %s569_s1 = scalar_lea.vmem %s22_s16, 128  ;;  %p574_p12 = scmp.lt.s32.totalorder %s22_s16, %s22_s16 }
  0x1c   :  { %p570_p11 = scmp.ne.s32.totalorder %s22_s16, %s569_s1  ;;  %p575_p13 = scmp.lt.s32.totalorder %s569_s1, %s569_s1 }
  0x1e   :  { %p576_p0 = por %p575_p13, %p574_p12 }
  0x20   :  { %p577_p1 = pnand %p576_p0, %p570_p11 }
  0x22   :  { %580 = shalt.err (!%p577_p1)
}
  0x23   :  { %24 = dma.hbm_to_vmem [thread:$0]  %s769_s0, 128, %s22_s16, [#allocation3]  }
  0x24   :  { %s581_s30 = scalar_lea.hbm %s772_s3, 2048 }
  0x25   :  { %p582_p2 = scmp.ne.s32.totalorder %s772_s3, %s581_s30  ;;  %p585_p3 = scmp.lt.u32.totalorder %s581_s30, %s772_s3 }
  0x27   :  { %p587_p4 = pnand %p585_p3, %p582_p2 }
  0x29   :  { %590 = shalt.err (!%p587_p4)
}
  0x2a   :  { %s591_s14 = scalar_lea.vmem %s45_s18, 2048  ;;  %p596_p6 = scmp.lt.s32.totalorder %s45_s18, %s45_s18 }
  0x2b   :  { %p592_p5 = scmp.ne.s32.totalorder %s45_s18, %s591_s14  ;;  %p597_p7 = scmp.lt.s32.totalorder %s591_s14, %s591_s14 }
  0x2d   :  { %p598_p8 = por %p597_p7, %p596_p6 }
  0x2f   :  { %p599_p9 = pnand %p598_p8, %p592_p5 }
  0x31   :  { %602 = shalt.err (!%p599_p9)
}
  0x32   :  { %50 = dma.hbm_to_vmem [thread:$0]  %s772_s3, 2048, %s45_s18, [#allocation5], %s632_s11, %s632_s11, %s633_s12  }
  0x33   :  { %s636_s16 = smov [#allocation7]   ;;  %s603_s21 = scalar_lea.hbm %s774_s5, 2048 }
  0x34   :  { %s58_s17 = sshll.u32 %s636_s16, 4  ;;  %p604_p10 = scmp.ne.s32.totalorder %s774_s5, %s603_s21  ;;  %s59_s17 = int_to_ptr.vmem [resolvable:$true] %s58_s17 }
  0x35   :  { %p607_p11 = scmp.lt.u32.totalorder %s603_s21, %s774_s5 }
  0x37   :  { %p609_p12 = pnand %p607_p11, %p604_p10 }
  0x39   :  { %612 = shalt.err (!%p609_p12)
}
  0x3a   :  { %s613_s1 = scalar_lea.vmem %s59_s17, 2048  ;;  %p618_p0 = scmp.lt.s32.totalorder %s59_s17, %s59_s17 }
  0x3b   :  { %p614_p13 = scmp.ne.s32.totalorder %s59_s17, %s613_s1  ;;  %p619_p1 = scmp.lt.s32.totalorder %s613_s1, %s613_s1 }
  0x3d   :  { %p620_p2 = por %p619_p1, %p618_p0 }
  0x3f   :  { %p621_p3 = pnand %p620_p2, %p614_p13 }
  0x41   :  { %624 = shalt.err (!%p621_p3)
}
  0x42   :  { %64 = dma.hbm_to_vmem [thread:$0]  %s774_s5, 2048, %s59_s17, [#allocation8], %s632_s11, %s632_s11, %s633_s12  }
  0x43   :  { %625 = dma.done.wait [#allocation3], 128  }
  0x44   :  { %626 = vsyncadd [#allocation3], 4294967168 }
  0x45   :  { %627 = dma.done.wait [#allocation5], 2304  }
  0x46   :  { %628 = vsyncadd [#allocation5], 4294964992 }
  0x47   :  { %629 = dma.done.wait [#allocation8], 2048  }
  0x48   :  { %630 = vsyncadd [#allocation8], 4294965248  ;;  %v637_v0 = vmov 0.0|0.0   ;;  %vm638_vm0 = vmmov 0   ;;  %v639_v1 = vmov 0.0   ;;  %v80_v2 = vld [vmem:[#allocation4] sm:$0xff] }
  0x49   :  { %477 = vmatprep.subr.bf16.mxu0 %v637_v0  ;;  %404 = vmatprep.mubr.msk.f32.mxu0 %vm638_vm0, %v639_v1  ;;  %v81_v3 = vld [vmem:[#allocation4 + $0x8] sm:$0xff]  ;;  %v164_v5 = vld [vmem:[#allocation6] sm:$0xff]  ;;  %v165_v6 = vld [vmem:[#allocation6 + $0x8] sm:$0xff]  ;;  %vm89_vm1 = vcmask 130048  }
  0x4a   :  { %480 = vmatprep.subr.bf16.mxu1 %v637_v0  ;;  %439 = vmatprep.mubr.msk.f32.mxu1 %vm638_vm0, %v639_v1  ;;  %v478_v4 = vpack.c.bf16 %v81_v3, %v80_v2  ;;  %v166_v7 = vld [vmem:[#allocation6 + $0x10] sm:$0xff]  ;;  %v481_v8 = vpack.c.bf16 %v165_v6, %v164_v5  ;;  %v167_v9 = vld [vmem:[#allocation6 + $0x18] sm:$0xff]  ;;  %v79_v10 = vld [vmem:[#allocation2] sm:$0xff] }
  0x4b   :  { %v484_v11 = vpack.c.bf16 %v167_v9, %v166_v7  ;;  %v168_v12 = vld [vmem:[#allocation6 + $0x20] sm:$0xff]  ;;  %v169_v13 = vld [vmem:[#allocation6 + $0x28] sm:$0xff]  ;;  %v170_v15 = vld [vmem:[#allocation6 + $0x30] sm:$0xff] }
  0x4c   :  { %479 = vmatpush3.bf16.msra.mxu0 %v478_v4  ;;  %482 = vmatpush3.bf16.msra.mxu1 %v481_v8  ;;  %v487_v14 = vpack.c.bf16 %v169_v13, %v168_v12  ;;  %v171_v16 = vld [vmem:[#allocation6 + $0x38] sm:$0xff]  ;;  %v172_v18 = vld [vmem:[#allocation6 + $0x40] sm:$0xff]  ;;  %v173_v19 = vld [vmem:[#allocation6 + $0x48] sm:$0xff] }
  0x4d   :  { %504 = vmatprep.subr.bf16.mxu0 %v637_v0  ;;  %483 = vmatprep.subr.bf16.mxu1 %v637_v0  ;;  %v490_v17 = vpack.c.bf16 %v171_v16, %v170_v15  ;;  %v493_v20 = vpack.c.bf16 %v173_v19, %v172_v18  ;;  %v174_v21 = vld [vmem:[#allocation6 + $0x50] sm:$0xff]  ;;  %v175_v22 = vld [vmem:[#allocation6 + $0x58] sm:$0xff]  ;;  %v176_v24 = vld [vmem:[#allocation6 + $0x60] sm:$0xff] }
  0x4e   :  { %v496_v23 = vpack.c.bf16 %v175_v22, %v174_v21  ;;  %v177_v25 = vld [vmem:[#allocation6 + $0x68] sm:$0xff]  ;;  %v178_v27 = vld [vmem:[#allocation6 + $0x70] sm:$0xff]  ;;  %v179_v28 = vld [vmem:[#allocation6 + $0x78] sm:$0xff] }
  0x4f   :  { %405 = vmatmul.mubr.msk.f32.vlgmr.msra.gmra.mrb[0].mxu0 %vm89_vm1, %v79_v10  ;;  %v499_v26 = vpack.c.bf16 %v177_v25, %v176_v24  ;;  %v502_v29 = vpack.c.bf16 %v179_v28, %v178_v27  ;;  %v258_v30 = vld [vmem:[#allocation7] sm:$0xff]  ;;  %v259_v31 = vld [vmem:[#allocation7 + $0x8] sm:$0xff]  ;;  %v260_v32 = vld [vmem:[#allocation7 + $0x10] sm:$0xff] }
  0x50   :  { %474 = vmatprep.mubr.msk.f32.mxu0 %vm638_vm0, %v639_v1  ;;  %485 = vmatpush3.bf16.msra.mxu1 %v484_v11  ;;  %v505_v33 = vpack.c.bf16 %v259_v31, %v258_v30  ;;  %v261_v34 = vld [vmem:[#allocation7 + $0x18] sm:$0xff]  ;;  %v262_v36 = vld [vmem:[#allocation7 + $0x20] sm:$0xff]  ;;  %v263_v37 = vld [vmem:[#allocation7 + $0x28] sm:$0xff] }
  0x51   :  { %486 = vmatprep.subr.bf16.mxu1 %v637_v0  ;;  %v508_v35 = vpack.c.bf16 %v261_v34, %v260_v32  ;;  %v511_v38 = vpack.c.bf16 %v263_v37, %v262_v36  ;;  %v264_v39 = vld [vmem:[#allocation7 + $0x30] sm:$0xff]  ;;  %v265_v40 = vld [vmem:[#allocation7 + $0x38] sm:$0xff]  ;;  %v266_v42 = vld [vmem:[#allocation7 + $0x40] sm:$0xff] }
  0x52   :  { %506 = vmatpush3.bf16.msra.mxu0 %v505_v33  ;;  %v514_v41 = vpack.c.bf16 %v265_v40, %v264_v39  ;;  %v267_v43 = vld [vmem:[#allocation7 + $0x48] sm:$0xff]  ;;  %v268_v45 = vld [vmem:[#allocation7 + $0x50] sm:$0xff]  ;;  %v269_v46 = vld [vmem:[#allocation7 + $0x58] sm:$0xff] }
  0x53   :  { %507 = vmatprep.subr.bf16.mxu0 %v637_v0  ;;  %v517_v44 = vpack.c.bf16 %v267_v43, %v266_v42  ;;  %v520_v47 = vpack.c.bf16 %v269_v46, %v268_v45  ;;  %v270_v48 = vld [vmem:[#allocation7 + $0x60] sm:$0xff]  ;;  %v271_v49 = vld [vmem:[#allocation7 + $0x68] sm:$0xff]  ;;  %v272_v56 = vld [vmem:[#allocation7 + $0x70] sm:$0xff] }
  0x54   :  { %488 = vmatpush3.bf16.msra.mxu1 %v487_v14  ;;  %v523_v50 = vpack.c.bf16 %v271_v49, %v270_v48  ;;  %v359_v51 = vld [vmem:[%s771_s2] ss:$0 sm:$0xff]  ;;  %v273_v57 = vld [vmem:[#allocation7 + $0x78] sm:$0xff] }
  0x55   :  { %489 = vmatprep.subr.bf16.mxu1 %v637_v0  ;;  %v526_v58 = vpack.c.bf16 %v273_v57, %v272_v56  ;;  %v361_v59 = vld [vmem:[%s773_s4] ss:$0 sm:$0xff] }
  0x56   :  { %509 = vmatpush3.bf16.msra.mxu0 %v508_v35 }
  0x57   :  { %510 = vmatprep.subr.bf16.mxu0 %v637_v0 }
  0x58   :  { %491 = vmatpush3.bf16.msra.mxu1 %v490_v17 }
  0x59   :  { %492 = vmatprep.subr.bf16.mxu1 %v637_v0 }
  0x5a   :  { %512 = vmatpush3.bf16.msra.mxu0 %v511_v38 }
  0x5b   :  { %513 = vmatprep.subr.bf16.mxu0 %v637_v0 }
  0x5c   :  { %494 = vmatpush3.bf16.msra.mxu1 %v493_v20 }
  0x5d   :  { %495 = vmatprep.subr.bf16.mxu1 %v637_v0 }
  0x5e   :  { %515 = vmatpush3.bf16.msra.mxu0 %v514_v41 }
  0x5f   :  { %516 = vmatprep.subr.bf16.mxu0 %v637_v0 }
  0x60   :  { %497 = vmatpush3.bf16.msra.mxu1 %v496_v23 }
  0x61   :  { %498 = vmatprep.subr.bf16.mxu1 %v637_v0 }
  0x62   :  { %518 = vmatpush3.bf16.msra.mxu0 %v517_v44 }
  0x63   :  { %519 = vmatprep.subr.bf16.mxu0 %v637_v0 }
  0x64   :  { %500 = vmatpush3.bf16.msra.mxu1 %v499_v26 }
  0x65   :  { %501 = vmatprep.subr.bf16.mxu1 %v637_v0 }
  0x66   :  { %521 = vmatpush3.bf16.msra.mxu0 %v520_v47 }
  0x67   :  { %522 = vmatprep.subr.bf16.mxu0 %v637_v0 }
  0x68   :  { %503 = vmatpush3.bf16.msra.mxu1 %v502_v29 }
  0x6a   :  { %524 = vmatpush3.bf16.msra.mxu0 %v523_v50 }
  0x6b   :  { %525 = vmatprep.subr.bf16.mxu0 %v637_v0  ;;  %v362_v0 = vld [vmem:[%s775_s6] ss:$0 sm:$0xff] }
  0x6e   :  { %527 = vmatpush3.bf16.msra.mxu0 %v526_v58 }
 0x122   :  { %v159_v52 = vpop.f32.mrb[0].mxu0 }
 0x123   :  { %v160_v53 = vadd.f32 %v359_v51, %v159_v52  ;;  %v406_v54 = vpop.f32.mrb[1].mxu0 }
 0x125   :  { %v163_v55 = vmax.f32 %v160_v53, 0.0 }
 0x127   :  { %440 = vmatmul.mubr.f32.vlgmr.msra.gmra.mrb[0].mxu1 %v163_v55 }
 0x1fa   :  { %v253_v60 = vpop.f32.mrb[0].mxu1 }
 0x1fb   :  { %v254_v61 = vadd.f32 %v361_v59, %v253_v60  ;;  %v441_v62 = vpop.f32.mrb[1].mxu1 }
 0x1fd   :  { %v257_v63 = vmax.f32 %v254_v61, 0.0 }
 0x1ff   :  { %475 = vmatmul.mubr.f32.vlgmr.msra.gmra.mrb[2].mxu0 %v257_v63 }
 0x2d2   :  { %v347_v1 = vpop.f32.mrb[2].mxu0 }
 0x2d3   :  { %v348_v2 = vadd.f32 %v362_v0, %v347_v1  ;;  %v476_v3 = vpop.f32.mrb[3].mxu0 }
 0x2d5   :  { %351 = vst [vmem:[%s776_s7] sm:$0xff] %v348_v2 }
 0x2d6   :  { %356 = vsyncpa [#allocation3], 1 }
 0x2d7   :  { %357 = vsyncpa [#allocation5], 1 }
 0x2d8   :  { %358 = vsyncpa [#allocation8], 1 }

</bundles_post_ra>
